<compile_context>
chip_gen: v7x
topology: tpu7x:2x2x1
jax: 0.10.0
libtpu: 0.0.40
codegen_flags: <defaults>
</compile_context>

<pallas_src>
import math

import jax
import jax.numpy as jnp
from jax.experimental import pallas as pl
from jax.experimental.pallas import tpu as pltpu

IMAGENET_MEAN = (0.485, 0.456, 0.406)
IMAGENET_STD = (0.229, 0.224, 0.225)

_TARGET_BLOCK_BYTES = 8 * 1024 * 1024   # per-buffer block target (~8 MiB)
_MIN_BLOCK_BYTES = 1 * 1024 * 1024      # never shrink blocks below ~1 MiB
_MIN_GRID_STEPS = 8                     # aim for >= this many pipeline steps
_VMEM_LIMIT_BYTES = 48 * 1024 * 1024    # 2x(in+out) ~32 MiB + headroom, < 64 MiB


def _sublane_multiple(itemsize: int) -> int:
    """Sublane multiple for a dtype: f32 -> 8, bf16 -> 16, int8/fp8 -> 32."""
    return max(8, 32 // itemsize)


def _choose_blocks(n_rows: int, hw: int, itemsize: int, n_channels: int):
    """Pick a legal, lane/sublane-dense (rb, tw) block for the (n_rows, hw) slab."""
    sub = _sublane_multiple(itemsize)
    # Rows per block: multiple of lcm(sublane multiple, C) so every block is
    # sublane-legal AND starts at a row index that is a multiple of C (static
    # per-row channel pattern) -- or the full row extent when B*C is small.
    row_unit = (sub * n_channels) // math.gcd(sub, n_channels)
    target_elems = max(128, _TARGET_BLOCK_BYTES // itemsize)

    if n_rows <= row_unit:
        rb = n_rows                                   # full extent: always legal
    else:
        units = max(1, target_elems // (row_unit * hw))
        rb = row_unit * units
        if rb >= n_rows:
            rb = n_rows                               # full extent

    # Lane tile: full extent if it fits the budget, else a multiple of 128.
    if rb * hw <= target_elems:
        tw = hw
    else:
        tw = max(128, (target_elems // rb) // 128 * 128)
        tw = min(tw, hw)

    # Ensure enough pipeline steps for DMA/compute overlap on large problems;
    # shrink the lane tile while blocks stay >= ~1 MiB.
    while pl.cdiv(n_rows, rb) * pl.cdiv(hw, tw) < _MIN_GRID_STEPS and tw > 128:
        cand = max(128, ((tw // 2) + 127) // 128 * 128)
        if cand >= tw or rb * cand * itemsize < _MIN_BLOCK_BYTES:
            break
        tw = cand

    return rb, tw


def imagenet_normalize(x: jax.Array, *, donate_input: bool = False) -> jax.Array:
    """Pallas implementation of ImageNetAugmentation.forward: (x - mean) / std.

    Args:
      x: (B, C, H, W) float image batch, C must be 3 (ImageNet channels).
      donate_input: if True, alias the output onto the input buffer
        (halves peak HBM footprint; only safe if the caller no longer needs x).
    Returns:
      (B, C, H, W) normalized images, same dtype as x.
    """
    B, C, H, W = x.shape
    assert C == len(IMAGENET_MEAN), "ImageNet normalization expects 3 channels"

    n_rows = B * C
    hw = H * W
    itemsize = x.dtype.itemsize
    x2d = x.reshape(n_rows, hw)   # free for contiguous NCHW layouts

    rb, tw = _choose_blocks(n_rows, hw, itemsize, C)
    grid = (pl.cdiv(n_rows, rb), pl.cdiv(hw, tw))

    # Fused per-channel affine y = x * (1/std) + (-mean/std), scalar constants.
    scale_c = tuple(float(1.0 / s) for s in IMAGENET_STD)
    bias_c = tuple(float(-m / s) for m, s in zip(IMAGENET_MEAN, IMAGENET_STD))

    def kernel(x_ref, o_ref):
        # Every row block starts at a row index that is a multiple of C
        # (rb % C == 0, or rb == n_rows == B*C), so row r of the block holds
        # channel r % C.  Rebuild the (rb, 1) scale/bias columns from scalar
        # constants in-kernel (tiny sublane iota + selects) instead of
        # DMA'ing a sideband input every grid step.
        ch = jax.lax.broadcasted_iota(jnp.int32, (rb, 1), 0) % C
        scale = jnp.float32(scale_c[C - 1])
        bias = jnp.float32(bias_c[C - 1])
        for c in range(C - 2, -1, -1):
            scale = jnp.where(ch == c, jnp.float32(scale_c[c]), scale)
            bias = jnp.where(ch == c, jnp.float32(bias_c[c]), bias)
        xv = x_ref[...].astype(jnp.float32)
        o_ref[...] = (xv * scale + bias).astype(o_ref.dtype)

    y2d = pl.pallas_call(
        kernel,
        out_shape=jax.ShapeDtypeStruct((n_rows, hw), x.dtype),
        grid=grid,
        in_specs=[pl.BlockSpec((rb, tw), lambda i, j: (i, j))],
        out_specs=pl.BlockSpec((rb, tw), lambda i, j: (i, j)),
        input_output_aliases=({0: 0} if donate_input else {}),
        compiler_params=pltpu.CompilerParams(
            dimension_semantics=("parallel", "parallel"),
            vmem_limit_bytes=_VMEM_LIMIT_BYTES,
        ),
    )(x2d)

    return y2d.reshape(B, C, H, W)


if __name__ == "__main__":
    key = jax.random.PRNGKey(0)
    mean = jnp.asarray(IMAGENET_MEAN, dtype=jnp.float32)[None, :, None, None]
    std = jnp.asarray(IMAGENET_STD, dtype=jnp.float32)[None, :, None, None]

    # Small NCHW batches consistent with the module (3 ImageNet channels);
    # the second shape has odd spatial dims to exercise a non-128-multiple
    # (full-extent) lane block.
    for shape in ((2, 3, 16, 16), (2, 3, 17, 19)):
        key, sub = jax.random.split(key)
        x = jax.random.uniform(sub, shape, dtype=jnp.float32)

        y = jax.block_until_ready(imagenet_normalize(x))

        # Pure-JAX reference (true divide vs fused scale/bias: ~1 ulp diff).
        ref = (x - mean) / std
        assert y.shape == x.shape and y.dtype == x.dtype
        assert jnp.allclose(y, ref, atol=1e-5, rtol=1e-5), shape

    print("KERNEL_OK")
</pallas_src>

<mosaic_0001>
module attributes {stable_mosaic.version = 11 : i64} {
  func.func @kernel(%arg0: i32, %arg1: i32, %arg2: memref<6x256xf32, #tpu.memory_space<vmem>>, %arg3: memref<6x256xf32, #tpu.memory_space<vmem>>) attributes {dimension_semantics = [#tpu.dimension_semantics<parallel>, #tpu.dimension_semantics<parallel>], iteration_bounds = array<i64: 1, 1>, scalar_prefetch = 0 : i64, scratch_operands = 0 : i64, tpu.core_type = #tpu.core_type<tc>, window_params = [{transform_indices = @transform_0, window_bounds = array<i64: 6, 256>}, {transform_indices = @transform_1, window_bounds = array<i64: 6, 256>}]} {
    %0 = tpu.iota {dimensions = array<i32: 0>} : vector<6x1xi32>
    %c3_i32 = arith.constant 3 : i32
    %c0_i32 = arith.constant 0 : i32
    %1 = arith.cmpi eq, %c3_i32, %c0_i32 : i32
    %c1_i32 = arith.constant 1 : i32
    %2 = arith.select %1, %c1_i32, %c3_i32 : i32
    %3 = vector.broadcast %2 : i32 to vector<6x1xi32>
    %4 = arith.remsi %0, %3 : vector<6x1xi32>
    %c0_i32_0 = arith.constant 0 : i32
    %5 = vector.broadcast %c0_i32_0 : i32 to vector<6x1xi32>
    %6 = arith.cmpi ne, %4, %5 : vector<6x1xi32>
    %c0_i32_1 = arith.constant 0 : i32
    %7 = vector.broadcast %c0_i32_1 : i32 to vector<6x1xi32>
    %8 = arith.cmpi slt, %4, %7 : vector<6x1xi32>
    %c0_i32_2 = arith.constant 0 : i32
    %9 = arith.cmpi slt, %2, %c0_i32_2 : i32
    %10 = vector.broadcast %9 : i1 to vector<6x1xi1>
    %11 = vector.broadcast %10 : vector<6x1xi1> to vector<6x1xi1>
    %12 = arith.xori %8, %11 : vector<6x1xi1>
    %13 = arith.andi %12, %6 : vector<6x1xi1>
    %14 = vector.broadcast %2 : i32 to vector<6x1xi32>
    %15 = arith.addi %4, %14 : vector<6x1xi32>
    %16 = arith.select %13, %15, %4 : vector<6x1xi1>, vector<6x1xi32>
    %c1_i32_3 = arith.constant 1 : i32
    %17 = vector.broadcast %c1_i32_3 : i32 to vector<6x1xi32>
    %18 = arith.cmpi eq, %16, %17 : vector<6x1xi32>
    %cst = arith.constant 4.46428585 : f32
    %cst_4 = arith.constant 4.44444466 : f32
    %19 = vector.broadcast %cst : f32 to vector<6x1xf32>
    %20 = vector.broadcast %cst_4 : f32 to vector<6x1xf32>
    %21 = arith.select %18, %19, %20 : vector<6x1xi1>, vector<6x1xf32>
    %c1_i32_5 = arith.constant 1 : i32
    %22 = vector.broadcast %c1_i32_5 : i32 to vector<6x1xi32>
    %23 = arith.cmpi eq, %16, %22 : vector<6x1xi32>
    %cst_6 = arith.constant -2.03571439 : f32
    %cst_7 = arith.constant -1.80444443 : f32
    %24 = vector.broadcast %cst_6 : f32 to vector<6x1xf32>
    %25 = vector.broadcast %cst_7 : f32 to vector<6x1xf32>
    %26 = arith.select %23, %24, %25 : vector<6x1xi1>, vector<6x1xf32>
    %c0_i32_8 = arith.constant 0 : i32
    %27 = vector.broadcast %c0_i32_8 : i32 to vector<6x1xi32>
    %28 = arith.cmpi eq, %16, %27 : vector<6x1xi32>
    %cst_9 = arith.constant 4.36681223 : f32
    %29 = vector.broadcast %cst_9 : f32 to vector<6x1xf32>
    %30 = arith.select %28, %29, %21 : vector<6x1xi1>, vector<6x1xf32>
    %c0_i32_10 = arith.constant 0 : i32
    %31 = vector.broadcast %c0_i32_10 : i32 to vector<6x1xi32>
    %32 = arith.cmpi eq, %16, %31 : vector<6x1xi32>
    %cst_11 = arith.constant -2.11790395 : f32
    %33 = vector.broadcast %cst_11 : f32 to vector<6x1xf32>
    %34 = arith.select %32, %33, %26 : vector<6x1xi1>, vector<6x1xf32>
    %c0 = arith.constant 0 : index
    %c0_12 = arith.constant 0 : index
    %35 = vector.load %arg2[%c0, %c0_12] : memref<6x256xf32, #tpu.memory_space<vmem>>, vector<6x256xf32>
    %36 = vector.broadcast %30 : vector<6x1xf32> to vector<6x256xf32>
    %37 = arith.mulf %35, %36 : vector<6x256xf32>
    %38 = vector.broadcast %34 : vector<6x1xf32> to vector<6x256xf32>
    %39 = arith.addf %37, %38 : vector<6x256xf32>
    %c0_13 = arith.constant 0 : index
    %c0_14 = arith.constant 0 : index
    %40 = vector.load %arg3[%c0_13, %c0_14] : memref<6x256xf32, #tpu.memory_space<vmem>>, vector<6x256xf32>
    tpu.vector_store %arg3[%c0_13, %c0_14], %39 {strides = array<i32>} : memref<6x256xf32, #tpu.memory_space<vmem>>, vector<6x256xf32>,
    return
  }
  func.func @transform_0(%arg0: i32, %arg1: i32) -> (i32, i32) {
    %c0_i32 = arith.constant 0 : i32
    return %arg0, %arg1 : i32, i32
  }
  func.func @transform_1(%arg0: i32, %arg1: i32) -> (i32, i32) {
    %c0_i32 = arith.constant 0 : i32
    return %arg0, %arg1 : i32, i32
  }
}

</mosaic_0001>

<bundles_post_ra>
// kernel: tpu_custom_call.1
= control target key start
LH: loop header
LB: loop body
LE: loop exit
PB: predicated region body
PF: predicated region fallthrough
CT: control target
= control target key end

     0   :  { %6 = vsyncpa [#allocation3], 0  ;;  %s164_s0 = inlined_call_operand.hbm [shape: f32[6,256], index: 0, kind: input, shape index: {}]   ;;  %s165_s1 = inlined_call_operand.hbm [shape: f32[6,256], index: 1, kind: output, shape index: {}]  }
   0x1   :  { %7 = vsyncpa [#allocation4], 0  ;;  %s122_s6 = smov [#allocation2]   ;;  %s74_s10 = scalar_lea.hbm %s164_s0, 256 }
   0x2   :  { %s14_s7 = sshll.u32 %s122_s6, 4  ;;  %p75_p0 = scmp.ne.s32.totalorder %s164_s0, %s74_s10  ;;  %s15_s7 = int_to_ptr.vmem [resolvable:$true] %s14_s7 }
   0x3   :  { %p78_p1 = scmp.lt.u32.totalorder %s74_s10, %s164_s0 }
   0x5   :  { %p80_p2 = pnand %p78_p1, %p75_p0 }
   0x7   :  { %83 = shalt.err (!%p80_p2)
}
   0x8   :  { %s84_s15 = scalar_lea.vmem %s15_s7, 256  ;;  %p89_p4 = scmp.lt.s32.totalorder %s15_s7, %s15_s7 }
   0x9   :  { %p85_p3 = scmp.ne.s32.totalorder %s15_s7, %s84_s15  ;;  %p90_p5 = scmp.lt.s32.totalorder %s84_s15, %s84_s15 }
   0xb   :  { %p91_p6 = por %p90_p5, %p89_p4 }
   0xd   :  { %p92_p7 = pnand %p91_p6, %p85_p3 }
   0xf   :  { %95 = shalt.err (!%p92_p7)
}
  0x10   :  { %17 = dma.hbm_to_vmem [thread:$0]  %s164_s0, 256, %s15_s7, [#allocation3]  }
  0x11   :  { %118 = dma.done.wait [#allocation3], 256  }
  0x12   :  { %119 = vsyncadd [#allocation3], 4294967040  ;;  %v21_v0 = vlaneseq  ;;  %v45_v9 = vld [vmem:[#allocation2] sm:$0x3f]  ;;  %v46_v10 = vld [vmem:[#allocation2 + $0x8] sm:$0x3f] }
  0x13   :  { %v123_v11 = vmov 4.4444447   ;;  %v124_v13 = vmov -1.8044444   ;;  %s125_s0 = smov [#allocation5]  }
  0x14   :  { %v22_v1 = vshrl.u32 %v21_v0, 7  ;;  %s59_s18 = sshll.u32 %s125_s0, 4  ;;  %s60_s18 = int_to_ptr.vmem [resolvable:$true] %s59_s18 }
  0x15   :  { %s96_s19 = scalar_lea.vmem %s60_s18, 256  ;;  %p101_p9 = scmp.lt.s32.totalorder %s60_s18, %s60_s18 }
  0x16   :  { %v148_v2 = vmul.u32.u64.low 2863311531, %v22_v1  ;;  %v149_v3 = vmul.u32.u64.high 2863311531, %v22_v1, %v148_v2  ;;  %p97_p8 = scmp.ne.s32.totalorder %s60_s18, %s96_s19  ;;  %p102_p10 = scmp.lt.s32.totalorder %s96_s19, %s96_s19 }
  0x18   :  { %v29_v4 = vshrl.u32 %v149_v3, 1  ;;  %p103_p11 = por %p102_p10, %p101_p9 }
  0x1a   :  { %v30_v5 = vmul.u32 3, %v29_v4  ;;  %p104_p12 = pnand %p103_p11, %p97_p8 }
  0x1c   :  { %v31_v6 = vsub.s32 %v22_v1, %v30_v5 }
  0x1e   :  { %vm34_vm0 = vcmp.ne.s32.totalorder %v31_v6, 0  ;;  %vm35_vm1 = vcmp.lt.s32.totalorder %v31_v6, 0  ;;  %v37_v7 = vadd.s32 3, %v31_v6 }
  0x1f   :  { %vm36_vm2 = vmand %vm35_vm1, %vm34_vm0 }
  0x20   :  { %v38_v8 = vsel %vm36_vm2, %v37_v7, %v31_v6 }
  0x21   :  { %vm39_vm3 = vcmp.eq.s32.totalorder %v38_v8, 1  ;;  %vm42_vm4 = vcmp.eq.s32.totalorder %v38_v8, 0 }
  0x22   :  { %v40_v12 = vsel %vm39_vm3, 4.464286, %v123_v11  ;;  %v41_v14 = vsel %vm39_vm3, -2.0357144, %v124_v13 }
  0x23   :  { %v43_v15 = vsel %vm42_vm4, 4.366812, %v40_v12  ;;  %v44_v16 = vsel %vm42_vm4, -2.117904, %v41_v14 }
  0x24   :  { %v47_v17 = vmul.f32 %v45_v9, %v43_v15  ;;  %v48_v18 = vmul.f32 %v46_v10, %v43_v15 }
  0x26   :  { %v49_v19 = vadd.f32 %v47_v17, %v44_v16  ;;  %v50_v20 = vadd.f32 %v48_v18, %v44_v16 }
  0x28   :  { %51 = vst [vmem:[#allocation5] sm:$0x3f] %v49_v19  ;;  %52 = vst [vmem:[#allocation5 + $0x8] sm:$0x3f] %v50_v20 }
  0x29   :  { %107 = shalt.err (!%p104_p12)
}
  0x2a   :  { %s108_s22 = scalar_lea.hbm %s165_s1, 256 }
  0x2b   :  { %p109_p13 = scmp.ne.s32.totalorder %s165_s1, %s108_s22  ;;  %p112_p0 = scmp.lt.u32.totalorder %s108_s22, %s165_s1 }
  0x2d   :  { %p114_p1 = pnand %p112_p0, %p109_p13 }
  0x2f   :  { %117 = shalt.err (!%p114_p1)
}
  0x30   :  { %62 = dma.vmem_to_hbm [thread:$0]  %s60_s18, 256, %s165_s1, [#allocation4]  }
  0x31   :  { %120 = dma.done.wait [#allocation4], 256  }
  0x32   :  { %121 = vsyncadd [#allocation4], 4294967040 }
  0x33   :  { %66 = vsyncpa [#allocation3], 1 }
  0x34   :  { %67 = vsyncpa [#allocation4], 1 }

</bundles_post_ra>
